<compile_context>
chip_gen: v7x
topology: tpu7x:2x2x1
jax: 0.10.0
libtpu: 0.0.40
codegen_flags: <defaults>
</compile_context>

<pallas_src>
import functools

import jax
import jax.numpy as jnp
from jax.experimental import pallas as pl
from jax.experimental.pallas import tpu as pltpu

LANE = 128
SUBLANE = 8


def _round_up(x, m):
    return (x + m - 1) // m * m


def _vmem_capacity():
    try:
        return int(pltpu.get_tpu_info().vmem_capacity_bytes)
    except Exception:
        return 64 << 20  # conservative fallback (v7x per-TC VMEM)


def _column_layout(d_model, num_positions):
    """Per-table real dims + 128-aligned padded dims/offsets inside packed W."""
    unit_d = d_model // num_positions
    dims = tuple(
        unit_d + (d_model % num_positions if i == num_positions - 1 else 0)
        for i in range(num_positions))
    dims_pad = tuple(_round_up(d, LANE) for d in dims)
    offs_pad, off = [], 0
    for d in dims_pad:
        offs_pad.append(off)
        off += d
    return dims, dims_pad, tuple(offs_pad), off  # off == padded d_model (D_pad)


# --------------------------------------------------------------------------
# Path 1: one-hot matmul (W VMEM-resident; small / medium max_node)
# --------------------------------------------------------------------------
def _onehot_matmul_kernel(idx_ref, w_ref, out_ref, *, v_pad, col_offsets, col_dims):
    # idx_ref : [n_tile, P]      int32, node-major (idx[:, p] is sublane-oriented)
    # w_ref   : [v_pad, D_pad]   tables packed at 128-aligned column offsets
    # out_ref : [n_tile, D_pad]
    idx = idx_ref[...]
    n_tile = idx.shape[0]
    col = jax.lax.broadcasted_iota(jnp.int32, (n_tile, v_pad), 1)   # hoisted once
    for p, (off, dim) in enumerate(zip(col_offsets, col_dims)):     # P small & static
        rows = idx[:, p:p + 1]                                      # [n_tile, 1]
        onehot = (col == rows).astype(w_ref.dtype)                  # 0/1 exact in any dtype
        # gather == one-hot @ table slab; off/dim are multiples of 128 so the W
        # slice is a view (no VMEM re-copy) and the store is lane-dense/unmasked.
        slab = jnp.dot(onehot, w_ref[:, off:off + dim],
                       preferred_element_type=jnp.float32)
        out_ref[:, off:off + dim] = slab.astype(out_ref.dtype)


def _matmul_path(indices, packed_w, dims_pad, offs_pad, d_pad, n_nodes, n_tile=None):
    num_pos = indices.shape[0]
    v_pad = packed_w.shape[0]
    out_dtype = packed_w.dtype
    out_isz = packed_w.dtype.itemsize
    w_bytes = v_pad * d_pad * out_isz

    vmem_cap = _vmem_capacity()
    budget = int(vmem_cap * 0.75)
    # v6e/v5e (128 MiB VMEM) can afford bigger tiles than v7x (64 MiB/TC)
    tile_cap = 1024 if vmem_cap >= (96 << 20) else 512

    idx_nm = indices.T.astype(jnp.int32)  # [N, P] node-major

    if n_tile is None:
        if n_nodes > 2 * SUBLANE:
            # >= 2 grid steps so the "parallel" axis can shard across v7x's 2 TCs
            n_tile = min(tile_cap, _round_up(pl.cdiv(n_nodes, 2), SUBLANE))
        else:
            n_tile = _round_up(max(n_nodes, 1), SUBLANE)
    n_tile = max(SUBLANE, _round_up(n_tile, SUBLANE))

    def _need(t):
        return (w_bytes                       # W, single-buffered (Buffered(1))
                + 2 * t * d_pad * out_isz     # output tile, double-buffered
                + 2 * t * num_pos * 4)        # index tile, double-buffered

    while n_tile > SUBLANE and _need(n_tile) > budget:
        n_tile = max(SUBLANE, _round_up(n_tile // 2, SUBLANE))

    n_pad = _round_up(n_nodes, n_tile)
    if n_pad != n_nodes:
        idx_nm = jnp.pad(idx_nm, ((0, n_pad - n_nodes), (0, 0)))  # pad rows -> index 0

    kernel = functools.partial(_onehot_matmul_kernel, v_pad=v_pad,
                               col_offsets=offs_pad, col_dims=dims_pad)

    vmem_limit = int(min(vmem_cap, max(int(1.5 * _need(n_tile)), 16 << 20)))
    cost = pl.CostEstimate(
        flops=2 * n_pad * v_pad * d_pad,
        transcendentals=0,
        bytes_accessed=w_bytes + n_pad * num_pos * 4 + n_pad * d_pad * out_isz)

    return pl.pallas_call(
        kernel,
        out_shape=jax.ShapeDtypeStruct((n_pad, d_pad), out_dtype),
        grid=(n_pad // n_tile,),
        in_specs=[
            pl.BlockSpec((n_tile, num_pos), lambda i: (i, 0)),
            # W resident across the whole grid; single-buffer it (it never changes).
            pl.BlockSpec((v_pad, d_pad), lambda i: (0, 0),
                         pipeline_mode=pl.Buffered(1)),
        ],
        out_specs=pl.BlockSpec((n_tile, d_pad), lambda i: (i, 0)),
        compiler_params=pltpu.CompilerParams(
            dimension_semantics=("parallel",),
            vmem_limit_bytes=vmem_limit),
        cost_estimate=cost,
    )(idx_nm, packed_w)


# --------------------------------------------------------------------------
# Path 2: scalar-prefetch row gather (W stays in HBM; large max_node)
# --------------------------------------------------------------------------
def _gather_row_kernel(idx_ref, w_hbm, out_ref, *, n_tile, col_offsets, col_dims):
    # idx_ref : SMEM [P, n_pad] int32 (scalar prefetch)
    # w_hbm   : HBM  [v_pad, D_pad]   (memory_space=pl.ANY; only touched rows move)
    # out_ref : VMEM [n_tile, D_pad]
    base = pl.program_id(0) * n_tile

    @pl.loop(0, n_tile)
    def _(r):
        for p, (off, dim) in enumerate(zip(col_offsets, col_dims)):  # static P
            row = idx_ref[p, base + r]
            pltpu.sync_copy(w_hbm.at[pl.ds(row, 1), pl.ds(off, dim)],
                            out_ref.at[pl.ds(r, 1), pl.ds(off, dim)])


def _gather_path(indices, packed_w, dims_pad, offs_pad, d_pad, n_nodes):
    out_dtype = packed_w.dtype
    out_isz = packed_w.dtype.itemsize

    n_tile = min(256, _round_up(max(n_nodes, 1), SUBLANE))
    n_pad = _round_up(n_nodes, n_tile)
    idx_pm = indices.astype(jnp.int32)
    if n_pad != n_nodes:
        idx_pm = jnp.pad(idx_pm, ((0, 0), (0, n_pad - n_nodes)))  # pad cols -> index 0

    kernel = functools.partial(_gather_row_kernel, n_tile=n_tile,
                               col_offsets=offs_pad, col_dims=dims_pad)

    vmem_limit = int(min(_vmem_capacity(),
                         max(4 * n_tile * d_pad * out_isz, 16 << 20)))

    return pl.pallas_call(
        kernel,
        out_shape=jax.ShapeDtypeStruct((n_pad, d_pad), out_dtype),
        grid_spec=pltpu.PrefetchScalarGridSpec(
            num_scalar_prefetch=1,
            grid=(n_pad // n_tile,),
            in_specs=[pl.BlockSpec(memory_space=pl.ANY)],
            out_specs=pl.BlockSpec((n_tile, d_pad), lambda i, idx: (i, 0)),
        ),
        compiler_params=pltpu.CompilerParams(
            dimension_semantics=("parallel",),
            vmem_limit_bytes=vmem_limit),
    )(idx_pm, packed_w)


# --------------------------------------------------------------------------
# Public wrapper
# --------------------------------------------------------------------------
def concat_positional_embedding(indices, packed_w, *, d_model, num_positions,
                                max_node, n_tile=None, force_gather=False):
    """indices: int32 [P, N]; packed_w: [v_pad, D_pad] column-packed (see pack_tables).

    Returns [N, d_model] == concat_i tables[i][indices[i]]  (dropout p=0 == identity).
    """
    P, N = indices.shape
    assert P == num_positions
    dims, dims_pad, offs_pad, d_pad = _column_layout(d_model, num_positions)
    v_pad, d_pad_w = packed_w.shape
    assert d_pad_w == d_pad and v_pad >= max_node and v_pad % SUBLANE == 0

    w_bytes = v_pad * d_pad * packed_w.dtype.itemsize
    budget = int(_vmem_capacity() * 0.75)
    use_gather = force_gather or max_node > 2048 or w_bytes > budget // 2

    if use_gather:
        out_pad = _gather_path(indices, packed_w, dims_pad, offs_pad, d_pad, N)
    else:
        out_pad = _matmul_path(indices, packed_w, dims_pad, offs_pad, d_pad, N,
                               n_tile=n_tile)

    # strip node padding and the per-table 128-alignment padding (plain XLA slice)
    pieces = [out_pad[:N, off:off + d] for off, d in zip(offs_pad, dims)]
    return jnp.concatenate(pieces, axis=1)


# --------------------------------------------------------------------------
# Parameter construction helpers + pure-JAX reference
# --------------------------------------------------------------------------
def make_tables(key, d_model, num_positions, max_node):
    """Deterministic per-position tables with the same shapes as the PyTorch module."""
    dims, _, _, _ = _column_layout(d_model, num_positions)
    keys = jax.random.split(key, num_positions)
    tables = [jax.random.normal(keys[i], (max_node, dims[i]), jnp.float32)
              for i in range(num_positions)]
    return tables, dims


def pack_tables(tables, d_model, num_positions):
    """Pack P tables at 128-aligned column offsets into [round8(max_node), D_pad]."""
    dims, _, offs_pad, d_pad = _column_layout(d_model, num_positions)
    max_node = tables[0].shape[0]
    v_pad = _round_up(max_node, SUBLANE)
    W = jnp.zeros((v_pad, d_pad), tables[0].dtype)   # bf16 tables also supported
    for t, d, off in zip(tables, dims, offs_pad):
        W = W.at[:max_node, off:off + d].set(t)
    return W


def reference(indices, tables):
    # pure-JAX reference of the PyTorch forward (nn.Dropout(p=0) is the identity)
    return jnp.concatenate([tables[i][indices[i]] for i in range(len(tables))], axis=1)


if __name__ == "__main__":
    d_model = 30
    num_positions = 4
    max_node = 15
    N = 8  # number of nodes / sequence length

    key = jax.random.PRNGKey(0)
    k_tab, k_idx = jax.random.split(key)

    tables, dims = make_tables(k_tab, d_model, num_positions, max_node)
    packed_w = pack_tables(tables, d_model, num_positions)     # [16, 512] padded layout

    indices = jax.random.randint(k_idx, (num_positions, N), 0, max_node, dtype=jnp.int32)
    ref = reference(indices, tables)

    # default path: one-hot matmul with VMEM-resident, single-buffered W
    out = concat_positional_embedding(indices, packed_w, d_model=d_model,
                                      num_positions=num_positions, max_node=max_node)
    out = jax.block_until_ready(out)
    assert out.shape == (N, d_model), out.shape
    assert jnp.allclose(out, ref, atol=1e-5, rtol=1e-5), "matmul path mismatch vs reference"

    # large-table fallback: scalar-prefetch DMA row gather (forced here to exercise it)
    out_g = concat_positional_embedding(indices, packed_w, d_model=d_model,
                                        num_positions=num_positions, max_node=max_node,
                                        force_gather=True)
    out_g = jax.block_until_ready(out_g)
    assert jnp.allclose(out_g, ref, atol=1e-5, rtol=1e-5), "gather path mismatch vs reference"

    # NOTE: nn.Dropout(p=0) (the module default) is the identity at train and eval.
    # NOTE: out-of-range indices are not validated (nn.Embedding would raise); clamp upstream.
    print("KERNEL_OK")
</pallas_src>

<mosaic_0001>
module attributes {stable_mosaic.version = 11 : i64} {
  func.func @_onehot_matmul_kernel(%arg0: i32, %arg1: memref<8x4xi32, #tpu.memory_space<vmem>>, %arg2: memref<16x512xf32, #tpu.memory_space<vmem>>, %arg3: memref<8x512xf32, #tpu.memory_space<vmem>>) attributes {dimension_semantics = [#tpu.dimension_semantics<parallel>], iteration_bounds = array<i64: 1>, scalar_prefetch = 0 : i64, scratch_operands = 0 : i64, tpu.core_type = #tpu.core_type<tc>, window_params = [{transform_indices = @transform_0, window_bounds = array<i64: 8, 4>}, {pipeline_mode = #tpu.pipeline_mode<synchronous>, transform_indices = @transform_1, window_bounds = array<i64: 16, 512>}, {transform_indices = @transform_2, window_bounds = array<i64: 8, 512>}]} {
    %c0 = arith.constant 0 : index
    %c0_0 = arith.constant 0 : index
    %0 = vector.load %arg1[%c0, %c0_0] : memref<8x4xi32, #tpu.memory_space<vmem>>, vector<8x4xi32>
    %1 = tpu.iota {dimensions = array<i32: 1>} : vector<8x16xi32>
    %2 = vector.extract_strided_slice %0 {offsets = [0, 0], sizes = [8, 1], strides = [1, 1]} : vector<8x4xi32> to vector<8x1xi32>
    %3 = vector.broadcast %2 : vector<8x1xi32> to vector<8x16xi32>
    %4 = arith.cmpi eq, %1, %3 : vector<8x16xi32>
    %5 = arith.extui %4 : vector<8x16xi1> to vector<8x16xi32>
    %6 = arith.sitofp %5 : vector<8x16xi32> to vector<8x16xf32>
    %c0_1 = arith.constant 0 : index
    %c0_2 = arith.constant 0 : index
    %7 = vector.load %arg2[%c0_1, %c0_2] : memref<16x512xf32, #tpu.memory_space<vmem>>, vector<16x128xf32>
    %cst = arith.constant dense<0.000000e+00> : vector<8x128xf32>
    %8 = tpu.matmul %6, %7, %cst {dimension_numbers = #tpu.dot_dimension_numbers<[1], [0], [0], [1], [0, 0, 1, 1], [], []>} : vector<8x16xf32>, vector<16x128xf32>, vector<8x128xf32> -> vector<8x128xf32>
    %c0_3 = arith.constant 0 : index
    %c0_4 = arith.constant 0 : index
    %9 = vector.load %arg3[%c0_3, %c0_4] : memref<8x512xf32, #tpu.memory_space<vmem>>, vector<8x128xf32>
    tpu.vector_store %arg3[%c0_3, %c0_4], %8 {strides = array<i32>} : memref<8x512xf32, #tpu.memory_space<vmem>>, vector<8x128xf32>,
    %10 = vector.extract_strided_slice %0 {offsets = [0, 1], sizes = [8, 1], strides = [1, 1]} : vector<8x4xi32> to vector<8x1xi32>
    %11 = vector.broadcast %10 : vector<8x1xi32> to vector<8x16xi32>
    %12 = arith.cmpi eq, %1, %11 : vector<8x16xi32>
    %13 = arith.extui %12 : vector<8x16xi1> to vector<8x16xi32>
    %14 = arith.sitofp %13 : vector<8x16xi32> to vector<8x16xf32>
    %c0_5 = arith.constant 0 : index
    %c128 = arith.constant 128 : index
    %15 = vector.load %arg2[%c0_5, %c128] : memref<16x512xf32, #tpu.memory_space<vmem>>, vector<16x128xf32>
    %cst_6 = arith.constant dense<0.000000e+00> : vector<8x128xf32>
    %16 = tpu.matmul %14, %15, %cst_6 {dimension_numbers = #tpu.dot_dimension_numbers<[1], [0], [0], [1], [0, 0, 1, 1], [], []>} : vector<8x16xf32>, vector<16x128xf32>, vector<8x128xf32> -> vector<8x128xf32>
    %c0_7 = arith.constant 0 : index
    %c128_8 = arith.constant 128 : index
    %17 = vector.load %arg3[%c0_7, %c128_8] : memref<8x512xf32, #tpu.memory_space<vmem>>, vector<8x128xf32>
    tpu.vector_store %arg3[%c0_7, %c128_8], %16 {strides = array<i32>} : memref<8x512xf32, #tpu.memory_space<vmem>>, vector<8x128xf32>,
    %18 = vector.extract_strided_slice %0 {offsets = [0, 2], sizes = [8, 1], strides = [1, 1]} : vector<8x4xi32> to vector<8x1xi32>
    %19 = vector.broadcast %18 : vector<8x1xi32> to vector<8x16xi32>
    %20 = arith.cmpi eq, %1, %19 : vector<8x16xi32>
    %21 = arith.extui %20 : vector<8x16xi1> to vector<8x16xi32>
    %22 = arith.sitofp %21 : vector<8x16xi32> to vector<8x16xf32>
    %c0_9 = arith.constant 0 : index
    %c256 = arith.constant 256 : index
    %23 = vector.load %arg2[%c0_9, %c256] : memref<16x512xf32, #tpu.memory_space<vmem>>, vector<16x128xf32>
    %cst_10 = arith.constant dense<0.000000e+00> : vector<8x128xf32>
    %24 = tpu.matmul %22, %23, %cst_10 {dimension_numbers = #tpu.dot_dimension_numbers<[1], [0], [0], [1], [0, 0, 1, 1], [], []>} : vector<8x16xf32>, vector<16x128xf32>, vector<8x128xf32> -> vector<8x128xf32>
    %c0_11 = arith.constant 0 : index
    %c256_12 = arith.constant 256 : index
    %25 = vector.load %arg3[%c0_11, %c256_12] : memref<8x512xf32, #tpu.memory_space<vmem>>, vector<8x128xf32>
    tpu.vector_store %arg3[%c0_11, %c256_12], %24 {strides = array<i32>} : memref<8x512xf32, #tpu.memory_space<vmem>>, vector<8x128xf32>,
    %26 = vector.extract_strided_slice %0 {offsets = [0, 3], sizes = [8, 1], strides = [1, 1]} : vector<8x4xi32> to vector<8x1xi32>
    %27 = vector.broadcast %26 : vector<8x1xi32> to vector<8x16xi32>
    %28 = arith.cmpi eq, %1, %27 : vector<8x16xi32>
    %29 = arith.extui %28 : vector<8x16xi1> to vector<8x16xi32>
    %30 = arith.sitofp %29 : vector<8x16xi32> to vector<8x16xf32>
    %c0_13 = arith.constant 0 : index
    %c384 = arith.constant 384 : index
    %31 = vector.load %arg2[%c0_13, %c384] : memref<16x512xf32, #tpu.memory_space<vmem>>, vector<16x128xf32>
    %cst_14 = arith.constant dense<0.000000e+00> : vector<8x128xf32>
    %32 = tpu.matmul %30, %31, %cst_14 {dimension_numbers = #tpu.dot_dimension_numbers<[1], [0], [0], [1], [0, 0, 1, 1], [], []>} : vector<8x16xf32>, vector<16x128xf32>, vector<8x128xf32> -> vector<8x128xf32>
    %c0_15 = arith.constant 0 : index
    %c384_16 = arith.constant 384 : index
    %33 = vector.load %arg3[%c0_15, %c384_16] : memref<8x512xf32, #tpu.memory_space<vmem>>, vector<8x128xf32>
    tpu.vector_store %arg3[%c0_15, %c384_16], %32 {strides = array<i32>} : memref<8x512xf32, #tpu.memory_space<vmem>>, vector<8x128xf32>,
    return
  }
  func.func @transform_0(%arg0: i32) -> (i32, i32) {
    %c0_i32 = arith.constant 0 : i32
    %c0_i32_0 = arith.constant 0 : i32
    return %arg0, %c0_i32 : i32, i32
  }
  func.func @transform_1(%arg0: i32) -> (i32, i32) {
    %c0_i32 = arith.constant 0 : i32
    %c0_i32_0 = arith.constant 0 : i32
    %c0_i32_1 = arith.constant 0 : i32
    return %c0_i32, %c0_i32_0 : i32, i32
  }
  func.func @transform_2(%arg0: i32) -> (i32, i32) {
    %c0_i32 = arith.constant 0 : i32
    %c0_i32_0 = arith.constant 0 : i32
    return %arg0, %c0_i32 : i32, i32
  }
}

</mosaic_0001>

<bundles_post_ra>
// kernel: tpu_custom_call.1
= control target key start
LH: loop header
LB: loop body
LE: loop exit
PB: predicated region body
PF: predicated region fallthrough
CT: control target
= control target key end

     0   :  { %7 = vsyncpa [#allocation3], 0  ;;  %s558_s0 = inlined_call_operand.vmem [shape: s32[8,4], index: 0, kind: input, shape index: {}]   ;;  %s559_s1 = inlined_call_operand.hbm [shape: f32[16,512], index: 1, kind: input, shape index: {}]   ;;  %s560_s2 = inlined_call_operand.hbm [shape: f32[8,512], index: 2, kind: output, shape index: {}]  }
   0x1   :  { %8 = vsyncpa [#allocation4], 0  ;;  %s497_s9 = smov [#allocation2]   ;;  %s449_s13 = scalar_lea.hbm %s559_s1, 1024 }
   0x2   :  { %s16_s10 = sshll.u32 %s497_s9, 4  ;;  %p450_p0 = scmp.ne.s32.totalorder %s559_s1, %s449_s13  ;;  %s17_s10 = int_to_ptr.vmem [resolvable:$true] %s16_s10 }
   0x3   :  { %p453_p1 = scmp.lt.u32.totalorder %s449_s13, %s559_s1 }
   0x5   :  { %p455_p2 = pnand %p453_p1, %p450_p0 }
   0x7   :  { %458 = shalt.err (!%p455_p2)
}
   0x8   :  { %s459_s18 = scalar_lea.vmem %s17_s10, 1024  ;;  %p464_p4 = scmp.lt.s32.totalorder %s17_s10, %s17_s10 }
   0x9   :  { %p460_p3 = scmp.ne.s32.totalorder %s17_s10, %s459_s18  ;;  %p465_p5 = scmp.lt.s32.totalorder %s459_s18, %s459_s18 }
   0xb   :  { %p466_p6 = por %p465_p5, %p464_p4 }
   0xd   :  { %p467_p7 = pnand %p466_p6, %p460_p3 }
   0xf   :  { %470 = shalt.err (!%p467_p7)
}
  0x10   :  { %s498_s19 = smov 512   ;;  %s499_s20 = smov 32  }
  0x11   :  { %22 = dma.hbm_to_vmem [thread:$0]  %s559_s1, 1024, %s17_s10, [#allocation3], %s498_s19, %s498_s19, %s499_s20  }
  0x12   :  { %493 = dma.done.wait [#allocation3], 1024  }
  0x13   :  { %494 = vsyncadd [#allocation3], 4294966272  ;;  %v500_v0 = vmov 0   ;;  %v501_v1 = vmov 2   ;;  %v502_v2 = vmov 0.0|0.0   ;;  %v26_v3 = vld [vmem:[%s558_s0] sm:$0xff]  ;;  %v27_v13 = vlaneseq }
  0x14   :  { %444 = vset.pattern.permute.xlu0 %v500_v0  ;;  %446 = vset.pattern.permute.xlu1 %v501_v1  ;;  %v35_v4 = vld [vmem:[#allocation2] sm:$0xff]  ;;  %vm503_vm0 = vmmov 0   ;;  %v504_v7 = vmov 0.0   ;;  %v118_v8 = vld [vmem:[#allocation2 + $0x8] sm:$0xff]  ;;  %v505_v11 = vmov 1   ;;  %v506_v12 = vmov 3  }
  0x15   :  { %421 = vmatprep.subr.bf16.mxu0 %v502_v2  ;;  %424 = vmatprep.subr.bf16.mxu1 %v502_v2  ;;  %v36_v5 = vld [vmem:[#allocation2 + $0x20] sm:$0xff]  ;;  %v119_v9 = vld [vmem:[#allocation2 + $0x28] sm:$0xff]  ;;  %v28_v14 = vand.u32 127, %v27_v13  ;;  %v200_v15 = vld [vmem:[#allocation2 + $0x10] sm:$0xff]  ;;  %vm37_vm1 = vcmask 130048   ;;  %s507_s0 = smov [#allocation5]  }
  0x16   :  { %30 = vperm.xlu0 %444, %v26_v3   ;;  %195 = vperm.xlu1 %446, %v26_v3   ;;  %v422_v6 = vpack.c.bf16 %v36_v5, %v35_v4  ;;  %v425_v10 = vpack.c.bf16 %v119_v9, %v118_v8  ;;  %v201_v16 = vld [vmem:[#allocation2 + $0x30] sm:$0xff]  ;;  %v282_v21 = vld [vmem:[#allocation2 + $0x18] sm:$0xff]  ;;  %s364_s1 = sshll.u32 %s507_s0, 4  ;;  %s365_s1 = int_to_ptr.vmem [resolvable:$true] %s364_s1 }
  0x17   :  { %397 = vmatprep.mubr.msk.f32.mxu0 %vm503_vm0, %v504_v7  ;;  %404 = vmatprep.mubr.msk.f32.mxu1 %vm503_vm0, %v504_v7  ;;  %v428_v19 = vpack.c.bf16 %v201_v16, %v200_v15  ;;  %v283_v22 = vld [vmem:[#allocation2 + $0x38] sm:$0xff]  ;;  %s471_s25 = scalar_lea.vmem %s365_s1, 512  ;;  %p476_p9 = scmp.lt.s32.totalorder %s365_s1, %s365_s1 }
  0x18   :  { %423 = vmatpush3.bf16.msra.mxu0 %v422_v6  ;;  %426 = vmatpush3.bf16.msra.mxu1 %v425_v10  ;;  %v431_v25 = vpack.c.bf16 %v283_v22, %v282_v21  ;;  %p472_p8 = scmp.ne.s32.totalorder %s365_s1, %s471_s25  ;;  %p477_p10 = scmp.lt.s32.totalorder %s471_s25, %s471_s25 }
  0x19   :  { %427 = vmatprep.subr.bf16.mxu0 %v502_v2  ;;  %430 = vmatprep.subr.bf16.mxu1 %v502_v2 }
  0x1a   :  { %445 = vset.pattern.permute.xlu0 %v505_v11  ;;  %447 = vset.pattern.permute.xlu1 %v506_v12  ;;  %p478_p11 = por %p477_p10, %p476_p9 }
  0x1b   :  { %113 = vperm.xlu0 %445, %v26_v3   ;;  %277 = vperm.xlu1 %447, %v26_v3  }
  0x1c   :  { %p479_p12 = pnand %p478_p11, %p472_p8 }
  0x1f   :  { %448 = vset.pattern.permute.xlu0 %v506_v12 }
  0x95   :  { %v31_v17 = vpop.permute.xlu0 %30  ;;  %v196_v18 = vpop.permute.xlu1 %195 }
  0x96   :  { %vm32_vm2 = vcmp.eq.s32.totalorder %v28_v14, %v31_v17  ;;  %vm197_vm3 = vcmp.eq.s32.totalorder %v28_v14, %v196_v18 }
  0x97   :  { %v373_v20 = vsel %vm32_vm2, 1.0, %v504_v7  ;;  %v377_v23 = vsel %vm197_vm3, 1.0, %v504_v7 }
  0x98   :  { %398 = vmatmul.mubr.msk.f32.vlgmr.msra.gmra.mrb[0].mxu0 %vm37_vm1, %v373_v20 }
  0x99   :  { %429 = vmatpush3.bf16.msra.mxu0 %v428_v19  ;;  %411 = vmatprep.mubr.msk.f32.mxu0 %vm503_vm0, %v504_v7 }
  0x9a   :  { %v114_v24 = vpop.permute.xlu0 %113  ;;  %v278_v26 = vpop.permute.xlu1 %277 }
  0x9b   :  { %vm115_vm4 = vcmp.eq.s32.totalorder %v28_v14, %v114_v24  ;;  %vm279_vm5 = vcmp.eq.s32.totalorder %v28_v14, %v278_v26 }
  0x9c   :  { %v375_v27 = vsel %vm115_vm4, 1.0, %v504_v7  ;;  %412 = vmatmul.mubr.msk.f32.vlgmr.msra.gmra.mrb[2].mxu0 %vm37_vm1, %v377_v23  ;;  %v379_v28 = vsel %vm279_vm5, 1.0, %v504_v7 }
  0x9d   :  { %405 = vmatmul.mubr.msk.f32.vlgmr.msra.gmra.mrb[0].mxu1 %vm37_vm1, %v375_v27 }
  0x9e   :  { %432 = vmatpush3.bf16.msra.mxu1 %v431_v25  ;;  %418 = vmatprep.mubr.msk.f32.mxu1 %vm503_vm0, %v504_v7 }
  0xa1   :  { %419 = vmatmul.mubr.msk.f32.vlgmr.msra.gmra.mrb[2].mxu1 %vm37_vm1, %v379_v28 }
 0x16b   :  { %v107_v29 = vpop.f32.mrb[0].mxu0 }
 0x16c   :  { %111 = vst [vmem:[#allocation5] sm:$0xff] %v107_v29  ;;  %v399_v30 = vpop.f32.mrb[1].mxu0 }
 0x16f   :  { %v271_v31 = vpop.f32.mrb[2].mxu0 }
 0x170   :  { %275 = vst [vmem:[#allocation5 + $0x10] sm:$0xff] %v271_v31  ;;  %v189_v32 = vpop.f32.mrb[0].mxu1  ;;  %v413_v33 = vpop.f32.mrb[3].mxu0 }
 0x171   :  { %193 = vst [vmem:[#allocation5 + $0x8] sm:$0xff] %v189_v32  ;;  %v406_v34 = vpop.f32.mrb[1].mxu1 }
 0x174   :  { %v353_v35 = vpop.f32.mrb[2].mxu1 }
 0x175   :  { %357 = vst [vmem:[#allocation5 + $0x18] sm:$0xff] %v353_v35  ;;  %v420_v36 = vpop.f32.mrb[3].mxu1 }
 0x176   :  { %482 = shalt.err (!%p479_p12)
}
 0x177   :  { %s483_s28 = scalar_lea.hbm %s560_s2, 512 }
 0x178   :  { %p484_p13 = scmp.ne.s32.totalorder %s560_s2, %s483_s28  ;;  %p487_p0 = scmp.lt.u32.totalorder %s483_s28, %s560_s2 }
 0x17a   :  { %p489_p1 = pnand %p487_p0, %p484_p13 }
 0x17c   :  { %492 = shalt.err (!%p489_p1)
}
 0x17d   :  { %367 = dma.vmem_to_hbm [thread:$0]  %s365_s1, 512, %s560_s2, [#allocation4]  }
 0x17e   :  { %495 = dma.done.wait [#allocation4], 512  }
 0x17f   :  { %496 = vsyncadd [#allocation4], 4294966784 }
 0x180   :  { %371 = vsyncpa [#allocation3], 1 }
 0x181   :  { %372 = vsyncpa [#allocation4], 1 }

</bundles_post_ra>
